<compile_context>
chip_gen: v7x
topology: tpu7x:2x2x1
jax: 0.10.0
libtpu: 0.0.40
codegen_flags: <defaults>
</compile_context>

<pallas_src>
import jax
import jax.numpy as jnp
from jax.experimental import pallas as pl
from jax.experimental.pallas import tpu as pltpu

_LANE = 128      # vreg lane width
_SUBLANE = 8     # vreg sublane count (fp32)


def _round_up(n, m):
    return ((n + m - 1) // m) * m


def _qnet_kernel(x_ref, w1_ref, b1_ref, w2_ref, b2_ref, o_ref):
    # Cast x tile to bf16 in-kernel (no extra HBM pass); weights are bf16.
    x = x_ref[...].astype(jnp.bfloat16)
    # hidden = relu(x @ W1 + b1), fp32 MXU accumulation, lane-dense (128k) h.
    h = jnp.dot(x, w1_ref[...], preferred_element_type=jnp.float32)
    h = jnp.maximum(h + b1_ref[...], 0.0)
    # out = h @ W2 + b2  -> (tm, n_outputs), masked store (n_outputs < 128 ok).
    y = jnp.dot(h.astype(jnp.bfloat16), w2_ref[...],
                preferred_element_type=jnp.float32)
    o_ref[...] = (y + b2_ref[...]).astype(o_ref.dtype)


def init_params(key, n_inputs, n_hidden, n_outputs):
    """Torch-layout params (weight [out, in], bias [out]) with torch-like
    U(-1/sqrt(fan_in), 1/sqrt(fan_in)) init."""
    k1, k2, k3, k4 = jax.random.split(key, 4)
    lim1 = 1.0 / jnp.sqrt(n_inputs)
    lim2 = 1.0 / jnp.sqrt(n_hidden)
    return {
        "w1": jax.random.uniform(k1, (n_hidden, n_inputs), jnp.float32, -lim1, lim1),
        "b1": jax.random.uniform(k2, (n_hidden,), jnp.float32, -lim1, lim1),
        "w2": jax.random.uniform(k3, (n_outputs, n_hidden), jnp.float32, -lim2, lim2),
        "b2": jax.random.uniform(k4, (n_outputs,), jnp.float32, -lim2, lim2),
    }


def prepare_params(params, *, weight_dtype=jnp.bfloat16):
    """One-time layout prep (do NOT call per forward):
      - weights transposed to [in, out] and cast to bf16 (native MXU input),
      - biases reshaped to [1, out], kept fp32,
      - hidden dim zero-padded to a multiple of 128 (W1 cols, b1, W2 rows) so
        the hidden activation is lane-dense; padded hidden units are exactly 0
        after ReLU and contribute nothing to the second matmul."""
    w1_t = jnp.asarray(params["w1"]).T                   # [n_in, n_hid]
    b1 = jnp.asarray(params["b1"]).reshape(1, -1)        # [1, n_hid]
    w2_t = jnp.asarray(params["w2"]).T                   # [n_hid, n_out]
    b2 = jnp.asarray(params["b2"]).reshape(1, -1)        # [1, n_out]

    n_in, n_hid = w1_t.shape
    n_out = w2_t.shape[1]
    n_hid_pad = _round_up(n_hid, _LANE)

    w1_p = jnp.zeros((n_in, n_hid_pad), weight_dtype).at[:, :n_hid].set(
        w1_t.astype(weight_dtype))
    b1_p = jnp.zeros((1, n_hid_pad), jnp.float32).at[:, :n_hid].set(
        b1.astype(jnp.float32))
    w2_p = jnp.zeros((n_hid_pad, n_out), weight_dtype).at[:n_hid, :].set(
        w2_t.astype(weight_dtype))
    b2_p = b2.astype(jnp.float32)

    return {"w1": w1_p, "b1": b1_p, "w2": w2_p, "b2": b2_p}


def _choose_tm(batch, block_m):
    """Batch tile: multiple of 8 sublanes (or == batch for tiny batches).
    For batch > 16, ensure the grid has >= 2 steps so v7x's two TensorCores
    both get work; cap at block_m (amortizes ~0.35us/step grid overhead)."""
    if batch <= 2 * _SUBLANE:
        # Tiny RL-inference batch: one block == full batch dim (always legal).
        # At these sizes wall time is launch overhead; batch more states/call.
        return batch
    half = _round_up(pl.cdiv(batch, 2), _SUBLANE)
    return max(_SUBLANE, min(block_m, half))


def linear_qnet_forward(x, prepared, *, block_m=2048):
    """x: [batch, n_inputs] fp32 (or bf16).  prepared: prepare_params() output."""
    w1, b1, w2, b2 = prepared["w1"], prepared["b1"], prepared["w2"], prepared["b2"]
    batch, n_inputs = x.shape
    n_outputs = w2.shape[1]

    tm = _choose_tm(batch, block_m)
    grid = (pl.cdiv(batch, tm),)   # ragged last block handled by Pallas masking

    return pl.pallas_call(
        _qnet_kernel,
        out_shape=jax.ShapeDtypeStruct((batch, n_outputs), jnp.float32),
        grid=grid,
        in_specs=[
            pl.BlockSpec((tm, n_inputs), lambda i: (i, 0)),   # x: tiled over batch
            pl.BlockSpec(w1.shape, lambda i: (0, 0)),          # weights VMEM-resident
            pl.BlockSpec(b1.shape, lambda i: (0, 0)),
            pl.BlockSpec(w2.shape, lambda i: (0, 0)),
            pl.BlockSpec(b2.shape, lambda i: (0, 0)),
        ],
        out_specs=pl.BlockSpec((tm, n_outputs), lambda i: (i, 0)),
        compiler_params=pltpu.CompilerParams(
            dimension_semantics=("parallel",),   # batch grid splits across v7x TCs
        ),
    )(x, w1, b1, w2, b2)


def _reference(x, torch_params):
    # Pure-JAX reference with torch semantics: y = relu(x W1^T + b1) W2^T + b2
    h = jnp.maximum(x @ torch_params["w1"].T + torch_params["b1"], 0.0)
    return h @ torch_params["w2"].T + torch_params["b2"]


if __name__ == "__main__":
    key = jax.random.PRNGKey(0)
    k_params, k_x1, k_x2 = jax.random.split(key, 3)

    # Small shapes consistent with the module (Linear -> ReLU -> Linear).
    n_inputs, n_hidden, n_outputs = 16, 32, 8

    torch_params = init_params(k_params, n_inputs, n_hidden, n_outputs)
    prepared = prepare_params(torch_params)   # one-time layout prep

    # 1) Tiny inference-style batch (single grid step, block == full batch dim).
    batch = 4
    x = jax.random.normal(k_x1, (batch, n_inputs), jnp.float32)
    out = linear_qnet_forward(x, prepared)
    jax.block_until_ready(out)
    y_ref = _reference(x, torch_params)
    assert out.shape == (batch, n_outputs)
    # bf16 weights/x inside the kernel -> loosened tolerance (fp32 accumulation).
    assert jnp.allclose(out, y_ref, atol=3e-2, rtol=3e-2), "mismatch (batch=4)"

    # 2) Ragged multi-step grid (exercises cdiv grid + masked last block + 2 TCs).
    batch2 = 37
    x2 = jax.random.normal(k_x2, (batch2, n_inputs), jnp.float32)
    out2 = linear_qnet_forward(x2, prepared)
    jax.block_until_ready(out2)
    y_ref2 = _reference(x2, torch_params)
    assert out2.shape == (batch2, n_outputs)
    assert jnp.allclose(out2, y_ref2, atol=3e-2, rtol=3e-2), "mismatch (batch=37)"

    print("KERNEL_OK")
</pallas_src>

<mosaic_0001>
module attributes {stable_mosaic.version = 11 : i64} {
  func.func @_qnet_kernel(%arg0: i32, %arg1: memref<4x16xf32, #tpu.memory_space<vmem>>, %arg2: memref<16x128xbf16, #tpu.memory_space<vmem>>, %arg3: memref<1x128xf32, #tpu.memory_space<vmem>>, %arg4: memref<128x8xbf16, #tpu.memory_space<vmem>>, %arg5: memref<1x8xf32, #tpu.memory_space<vmem>>, %arg6: memref<4x8xf32, #tpu.memory_space<vmem>>) attributes {dimension_semantics = [#tpu.dimension_semantics<parallel>], iteration_bounds = array<i64: 1>, scalar_prefetch = 0 : i64, scratch_operands = 0 : i64, tpu.core_type = #tpu.core_type<tc>, window_params = [{transform_indices = @transform_0, window_bounds = array<i64: 4, 16>}, {pipeline_mode = #tpu.pipeline_mode<synchronous>, transform_indices = @transform_1, window_bounds = array<i64: 16, 128>}, {pipeline_mode = #tpu.pipeline_mode<synchronous>, transform_indices = @transform_2, window_bounds = array<i64: 1, 128>}, {pipeline_mode = #tpu.pipeline_mode<synchronous>, transform_indices = @transform_3, window_bounds = array<i64: 128, 8>}, {pipeline_mode = #tpu.pipeline_mode<synchronous>, transform_indices = @transform_4, window_bounds = array<i64: 1, 8>}, {transform_indices = @transform_5, window_bounds = array<i64: 4, 8>}]} {
    %c0 = arith.constant 0 : index
    %c0_0 = arith.constant 0 : index
    %0 = vector.load %arg1[%c0, %c0_0] : memref<4x16xf32, #tpu.memory_space<vmem>>, vector<4x16xf32>
    %1 = arith.truncf %0 : vector<4x16xf32> to vector<4x16xbf16>
    %c0_1 = arith.constant 0 : index
    %c0_2 = arith.constant 0 : index
    %2 = vector.load %arg2[%c0_1, %c0_2] : memref<16x128xbf16, #tpu.memory_space<vmem>>, vector<16x128xbf16>
    %cst = arith.constant dense<0.000000e+00> : vector<4x128xf32>
    %3 = tpu.matmul %1, %2, %cst {dimension_numbers = #tpu.dot_dimension_numbers<[1], [0], [0], [1], [0, 0, 1, 1], [], []>} : vector<4x16xbf16>, vector<16x128xbf16>, vector<4x128xf32> -> vector<4x128xf32>
    %c0_3 = arith.constant 0 : index
    %c0_4 = arith.constant 0 : index
    %4 = vector.load %arg3[%c0_3, %c0_4] : memref<1x128xf32, #tpu.memory_space<vmem>>, vector<1x128xf32>
    %5 = vector.broadcast %4 : vector<1x128xf32> to vector<4x128xf32>
    %6 = arith.addf %3, %5 : vector<4x128xf32>
    %cst_5 = arith.constant 0.000000e+00 : f32
    %7 = vector.broadcast %cst_5 : f32 to vector<4x128xf32>
    %8 = arith.maximumf %6, %7 : vector<4x128xf32>
    %9 = arith.truncf %8 : vector<4x128xf32> to vector<4x128xbf16>
    %c0_6 = arith.constant 0 : index
    %c0_7 = arith.constant 0 : index
    %10 = vector.load %arg4[%c0_6, %c0_7] : memref<128x8xbf16, #tpu.memory_space<vmem>>, vector<128x8xbf16>
    %cst_8 = arith.constant dense<0.000000e+00> : vector<4x8xf32>
    %11 = tpu.matmul %9, %10, %cst_8 {dimension_numbers = #tpu.dot_dimension_numbers<[1], [0], [0], [1], [0, 0, 1, 1], [], []>} : vector<4x128xbf16>, vector<128x8xbf16>, vector<4x8xf32> -> vector<4x8xf32>
    %c0_9 = arith.constant 0 : index
    %c0_10 = arith.constant 0 : index
    %12 = vector.load %arg5[%c0_9, %c0_10] : memref<1x8xf32, #tpu.memory_space<vmem>>, vector<1x8xf32>
    %13 = vector.broadcast %12 : vector<1x8xf32> to vector<4x8xf32>
    %14 = arith.addf %11, %13 : vector<4x8xf32>
    %c0_11 = arith.constant 0 : index
    %c0_12 = arith.constant 0 : index
    %15 = vector.load %arg6[%c0_11, %c0_12] : memref<4x8xf32, #tpu.memory_space<vmem>>, vector<4x8xf32>
    tpu.vector_store %arg6[%c0_11, %c0_12], %14 {strides = array<i32>} : memref<4x8xf32, #tpu.memory_space<vmem>>, vector<4x8xf32>,
    return
  }
  func.func @transform_0(%arg0: i32) -> (i32, i32) {
    %c0_i32 = arith.constant 0 : i32
    %c0_i32_0 = arith.constant 0 : i32
    return %arg0, %c0_i32 : i32, i32
  }
  func.func @transform_1(%arg0: i32) -> (i32, i32) {
    %c0_i32 = arith.constant 0 : i32
    %c0_i32_0 = arith.constant 0 : i32
    %c0_i32_1 = arith.constant 0 : i32
    return %c0_i32, %c0_i32_0 : i32, i32
  }
  func.func @transform_2(%arg0: i32) -> (i32, i32) {
    %c0_i32 = arith.constant 0 : i32
    %c0_i32_0 = arith.constant 0 : i32
    %c0_i32_1 = arith.constant 0 : i32
    return %c0_i32, %c0_i32_0 : i32, i32
  }
  func.func @transform_3(%arg0: i32) -> (i32, i32) {
    %c0_i32 = arith.constant 0 : i32
    %c0_i32_0 = arith.constant 0 : i32
    %c0_i32_1 = arith.constant 0 : i32
    return %c0_i32, %c0_i32_0 : i32, i32
  }
  func.func @transform_4(%arg0: i32) -> (i32, i32) {
    %c0_i32 = arith.constant 0 : i32
    %c0_i32_0 = arith.constant 0 : i32
    %c0_i32_1 = arith.constant 0 : i32
    return %c0_i32, %c0_i32_0 : i32, i32
  }
  func.func @transform_5(%arg0: i32) -> (i32, i32) {
    %c0_i32 = arith.constant 0 : i32
    %c0_i32_0 = arith.constant 0 : i32
    return %arg0, %c0_i32 : i32, i32
  }
}

</mosaic_0001>

<bundles_post_ra>
// kernel: tpu_custom_call.1
= control target key start
LH: loop header
LB: loop body
LE: loop exit
PB: predicated region body
PF: predicated region fallthrough
CT: control target
= control target key end

     0   :  { %v297_v1 = vmov 0.0   ;;  %vm298_vm0 = vmmov 0   ;;  %vm39_vm1 = vcmask 130048   ;;  %s378_s0 = inlined_call_operand.vmem [shape: f32[4,16], index: 0, kind: input, shape index: {}]   ;;  %s379_s1 = inlined_call_operand.vmem [shape: bf16[16,128], index: 1, kind: input, shape index: {}]   ;;  %s380_s2 = inlined_call_operand.vmem [shape: f32[1,128], index: 2, kind: input, shape index: {}]   ;;  %s381_s3 = inlined_call_operand.vmem [shape: bf16[128,8], index: 3, kind: input, shape index: {}]   ;;  %s382_s4 = inlined_call_operand.vmem [shape: f32[1,8], index: 4, kind: input, shape index: {}]   ;;  %s383_s5 = inlined_call_operand.hbm [shape: f32[4,8], index: 5, kind: output, shape index: {}]  }
   0x1   :  { %v264_v0 = vld [vmem:[%s379_s1] sm:$0xff]   ;;  %235 = vmatprep.subr.bf16.mxu0 %v297_v1  ;;  %241 = vmatprep.subr.bf16.mxu1 %v297_v1  ;;  %v266_v5 = vld [vmem:[%s381_s3 + $0x8] sm:$0xff]   ;;  %v267_v6 = vld [vmem:[%s381_s3 + $0x10] sm:$0xff]  }
   0x2   :  { %v22_v2 = vld [vmem:[%s378_s0] sm:$0xf]  ;;  %236 = vmatpush3.bf16.msra.mxu0 %v264_v0  ;;  %237 = vmatprep.mubr.msk.bf16.mxu0 %vm298_vm0, %v297_v1 }
   0x3   :  { %v23_v3 = vpack.c.bf16 %v22_v2, %v22_v2  ;;  %v265_v4 = vld [vmem:[%s381_s3] sm:$0xff]   ;;  %257 = vmatprep.mubr.msk.bf16.mxu1 %vm298_vm0, %v297_v1 }
   0x4   :  { %242 = vmatpush3.bf16.msra.mxu1 %v265_v4 }
   0x5   :  { %238 = vmatmul.mubr.msk.bf16.vlgmr.msra.gmra.mrb[0].mxu0 %vm39_vm1, %v23_v3  ;;  %243 = vmatprep.subr.bf16.mxu1 %v297_v1 }
   0x8   :  { %244 = vmatpush3.bf16.msra.mxu1 %v266_v5 }
   0x9   :  { %245 = vmatprep.subr.bf16.mxu1 %v297_v1 }
   0xa   :  { %10 = vsyncpa [#allocation3], 0  ;;  %v268_v7 = vld [vmem:[%s381_s3 + $0x18] sm:$0xff]   ;;  %v269_v8 = vld [vmem:[%s381_s3 + $0x20] sm:$0xff]   ;;  %s299_s15 = smov [#allocation2]   ;;  %vm196_vm2 = vcmask 60416  }
   0xb   :  { %v270_v9 = vld [vmem:[%s381_s3 + $0x28] sm:$0xff]   ;;  %v271_v10 = vld [vmem:[%s381_s3 + $0x30] sm:$0xff]   ;;  %v272_v11 = vld [vmem:[%s381_s3 + $0x38] sm:$0xff]   ;;  %s204_s16 = sshll.u32 %s299_s15, 4  ;;  %s205_s16 = int_to_ptr.vmem [resolvable:$true] %s204_s16 }
   0xc   :  { %246 = vmatpush3.bf16.msra.mxu1 %v267_v6  ;;  %v212_v12 = vld [vmem:[%s380_s2] ss:$0 sm:$0xff]  ;;  %s273_s2 = scalar_lea.vmem %s205_s16, 64  ;;  %p278_p1 = scmp.lt.s32.totalorder %s205_s16, %s205_s16 }
   0xd   :  { %247 = vmatprep.subr.bf16.mxu1 %v297_v1  ;;  %v215_v20 = vld [vmem:[%s382_s4] ss:$0 sm:$0xff]  ;;  %p274_p0 = scmp.ne.s32.totalorder %s205_s16, %s273_s2  ;;  %p279_p2 = scmp.lt.s32.totalorder %s273_s2, %s273_s2 }
   0xf   :  { %p280_p3 = por %p279_p2, %p278_p1 }
  0x10   :  { %248 = vmatpush3.bf16.msra.mxu1 %v268_v7 }
  0x11   :  { %249 = vmatprep.subr.bf16.mxu1 %v297_v1  ;;  %p281_p4 = pnand %p280_p3, %p274_p0 }
  0x14   :  { %250 = vmatpush3.bf16.msra.mxu1 %v269_v8 }
  0x15   :  { %251 = vmatprep.subr.bf16.mxu1 %v297_v1 }
  0x18   :  { %252 = vmatpush3.bf16.msra.mxu1 %v270_v9 }
  0x19   :  { %253 = vmatprep.subr.bf16.mxu1 %v297_v1 }
  0x1c   :  { %254 = vmatpush3.bf16.msra.mxu1 %v271_v10 }
  0x1d   :  { %255 = vmatprep.subr.bf16.mxu1 %v297_v1 }
  0x20   :  { %256 = vmatpush3.bf16.msra.mxu1 %v272_v11 }
  0xd8   :  { %v77_v13 = vpop.f32.mrb[0].mxu0 }
  0xd9   :  { %v78_v14 = vadd.f32 %v212_v12, %v77_v13  ;;  %v239_v15 = vpop.f32.mrb[1].mxu0 }
  0xda   :  { %v80_v16 = vpop.f32.mrb[2].mxu0 }
  0xdb   :  { %v83_v17 = vmax.f32 %v78_v14, 0.0  ;;  %v240_v18 = vpop.f32.mrb[3].mxu0 }
  0xdd   :  { %v84_v19 = vpack.c.bf16 %v83_v17, %v83_v17 }
  0xdf   :  { %258 = vmatmul.mubr.bf16.vlgmr.msra.gmra.mrb[0].mxu1 %v84_v19 }
 0x1b2   :  { %v190_v21 = vpop.f32.mrb[0].mxu1 }
 0x1b3   :  { %v191_v22 = vadd.f32 %v215_v20, %v190_v21  ;;  %v259_v23 = vpop.f32.mrb[1].mxu1 }
 0x1b4   :  { %v193_v24 = vpop.f32.mrb[2].mxu1 }
 0x1b5   :  { %v260_v25 = vpop.f32.mrb[3].mxu1  ;;  %197 = vst.msk [vmem:[#allocation2] sm:$0xf] %vm196_vm2, %v191_v22 }
 0x1b6   :  { %284 = shalt.err (!%p281_p4)
}
 0x1b7   :  { %s285_s4 = scalar_lea.hbm %s383_s5, 64 }
 0x1b8   :  { %p286_p5 = scmp.ne.s32.totalorder %s383_s5, %s285_s4  ;;  %p289_p6 = scmp.lt.u32.totalorder %s285_s4, %s383_s5 }
 0x1ba   :  { %p291_p7 = pnand %p289_p6, %p286_p5 }
 0x1bc   :  { %294 = shalt.err (!%p291_p7)
}
 0x1bd   :  { %207 = dma.vmem_to_hbm [thread:$0]  %s205_s16, 64, %s383_s5, [#allocation3]  }
 0x1be   :  { %295 = dma.done.wait [#allocation3], 64  }
 0x1bf   :  { %296 = vsyncadd [#allocation3], 4294967232 }
 0x1c0   :  { %211 = vsyncpa [#allocation3], 1 }

</bundles_post_ra>
